<compile_context>
chip_gen: v7x
topology: tpu7x:2x2x1
jax: 0.10.0
libtpu: 0.0.40
codegen_flags: <defaults>
</compile_context>

<pallas_src>
import functools

import numpy as np
import jax
import jax.numpy as jnp
from jax import lax
from jax.experimental import pallas as pl
from jax.experimental.pallas import tpu as pltpu

try:  # prefer the C implementation; the host Hungarian dominates wall clock
    from scipy.optimize import linear_sum_assignment as _scipy_lsa
except Exception:  # pragma: no cover
    _scipy_lsa = None

_LANES = 128
_SUBLANES = 8


def _round_up(x, m):
    return ((x + m - 1) // m) * m


# ----------------------------------------------------------------------------
# Kernel 1: score = sigmoid(x) * mask, kept only where > 0.5
# (lane-dense flattened layout: last dim is exactly 128 lanes)
# ----------------------------------------------------------------------------
def _score_kernel(x_ref, m_ref, o_ref):
    x = jax.nn.sigmoid(x_ref[...]) * m_ref[...]
    o_ref[...] = jnp.where(x > 0.5, x, 0.0)


@jax.jit
def _score(x, mask):
    B, L, _ = x.shape
    n = B * L * L
    rows = _round_up(pl.cdiv(n, _LANES), _SUBLANES)
    row_blk = min(rows, 1024)                    # ~512 KiB f32 per input tile
    rows_pad = _round_up(rows, row_blk)
    n_pad = rows_pad * _LANES

    def _flat(a):
        a = a.reshape(-1).astype(jnp.float32)
        return jnp.pad(a, (0, n_pad - n)).reshape(rows_pad, _LANES)

    spec = pl.BlockSpec((row_blk, _LANES), lambda r: (r, 0))
    out = pl.pallas_call(
        _score_kernel,
        out_shape=jax.ShapeDtypeStruct((rows_pad, _LANES), jnp.float32),
        grid=(rows_pad // row_blk,),
        in_specs=[spec, spec],
        out_specs=spec,
        compiler_params=pltpu.CompilerParams(
            dimension_semantics=("parallel",)),
    )(_flat(x), _flat(mask))
    return out.reshape(-1)[:n].reshape(B, L, L)


# ----------------------------------------------------------------------------
# Kernel 2: sec = bin*mask ; sec = sec + sec^T ; sequential row/column
# conflict resolution (sum > 1 -> keep only the first argmax), mirroring the
# PyTorch double loop.  M stays VMEM-resident in out_ref; a transposed copy
# M^T lives in a VMEM scratch so column statistics are O(L) row-slice reads.
# ----------------------------------------------------------------------------
def _resolve_kernel(bin_ref, mask_ref, out_ref, mt_ref, *, n_valid):
    Lp = out_ref.shape[-1]
    s = bin_ref[...] * mask_ref[...]
    sym = s + s.T                 # in-kernel transpose: no extra HBM streams
    out_ref[...] = sym            # working matrix M
    mt_ref[...] = sym             # M^T (sym is symmetric at this point)

    lane_ids = lax.broadcasted_iota(jnp.int32, (1, Lp), 1)    # hoisted iotas
    sub_ids = lax.broadcasted_iota(jnp.int32, (Lp, 1), 0)
    col_ids = lax.broadcasted_iota(jnp.int32, (Lp, Lp), 1)

    def body(i, carry):
        # ---- row i: if sum > 1, keep only the (first) argmax --------------
        row = out_ref[pl.ds(i, 1), :]                          # (1, Lp)
        rfire = jnp.sum(row) > 1.0
        rmax = jnp.max(row)
        ridx = jnp.min(jnp.where(row == rmax, lane_ids, Lp))   # first argmax
        onehot_r = (lane_ids == ridx).astype(jnp.float32)      # (1, Lp)
        out_ref[pl.ds(i, 1), :] = jnp.where(rfire, onehot_r, row)
        # keep M^T consistent: overwrite column i of M^T only when fired
        onehot_rc = (sub_ids == ridx).astype(jnp.float32)      # (Lp, 1)
        mt_ref[...] = jnp.where((col_ids == i) & rfire, onehot_rc, mt_ref[...])

        # ---- column i of the row-updated matrix (read as row i of M^T) ----
        colt = mt_ref[pl.ds(i, 1), :]                          # (1, Lp) == M[:, i]
        cfire = jnp.sum(colt) > 1.0
        cmax = jnp.max(colt)
        cidx = jnp.min(jnp.where(colt == cmax, lane_ids, Lp))
        onehot_c = (lane_ids == cidx).astype(jnp.float32)      # (1, Lp)
        mt_ref[pl.ds(i, 1), :] = jnp.where(cfire, onehot_c, colt)
        onehot_cc = (sub_ids == cidx).astype(jnp.float32)      # (Lp, 1)
        out_ref[...] = jnp.where((col_ids == i) & cfire, onehot_cc, out_ref[...])
        return carry

    lax.fori_loop(0, n_valid, body, 0, unroll=2)


@functools.partial(jax.jit, static_argnames=("n_valid",))
def _resolve(binary_p, mask_p, *, n_valid):
    B, Lp, _ = binary_p.shape
    spec = pl.BlockSpec((None, Lp, Lp), lambda b: (b, 0, 0))
    # 3 (Lp,Lp) blocks double-buffered + 1 scratch copy, with headroom.
    vmem_limit = int(min(64 * 2 ** 20, max(16 * 2 ** 20, 10 * Lp * Lp * 4)))
    return pl.pallas_call(
        functools.partial(_resolve_kernel, n_valid=n_valid),
        out_shape=jax.ShapeDtypeStruct((B, Lp, Lp), jnp.float32),
        grid=(B,),
        in_specs=[spec, spec],
        out_specs=spec,
        scratch_shapes=[pltpu.VMEM((Lp, Lp), jnp.float32)],
        input_output_aliases={0: 0},          # reuse the `binary` HBM buffer
        compiler_params=pltpu.CompilerParams(
            dimension_semantics=("parallel",),
            vmem_limit_bytes=vmem_limit),
    )(binary_p, mask_p)


# ----------------------------------------------------------------------------
# Host-side assignment (SciPy if available, else pure-Python Jonker-Volgenant)
# ----------------------------------------------------------------------------
def _linear_sum_assignment(cost):
    if _scipy_lsa is not None:
        return _scipy_lsa(cost)
    cost = np.asarray(cost, dtype=np.float64)
    n = cost.shape[0]
    INF = float("inf")
    u = np.zeros(n + 1)
    v = np.zeros(n + 1)
    p = np.zeros(n + 1, dtype=np.int64)
    way = np.zeros(n + 1, dtype=np.int64)
    for i in range(1, n + 1):
        p[0] = i
        j0 = 0
        minv = np.full(n + 1, INF)
        used = np.zeros(n + 1, dtype=bool)
        while True:
            used[j0] = True
            i0 = p[j0]
            delta = INF
            j1 = 0
            for j in range(1, n + 1):
                if not used[j]:
                    cur = cost[i0 - 1, j - 1] - u[i0] - v[j]
                    if cur < minv[j]:
                        minv[j] = cur
                        way[j] = j0
                    if minv[j] < delta:
                        delta = minv[j]
                        j1 = j
            for j in range(n + 1):
                if used[j]:
                    u[p[j]] += delta
                    v[j] -= delta
                else:
                    minv[j] -= delta
            j0 = j1
            if p[j0] == 0:
                break
        while True:
            j1 = way[j0]
            p[j0] = p[j1]
            j0 = j1
            if j0 == 0:
                break
    col_ind = np.zeros(n, dtype=np.int64)
    for j in range(1, n + 1):
        col_ind[p[j] - 1] = j - 1
    return np.arange(n), col_ind


def _hungarian_binary(score_np, padded_len):
    """Hungarian matching + mutual-pair filter (host side), built pre-padded."""
    B, L, _ = score_np.shape
    binary = np.zeros((B, padded_len, padded_len), dtype=np.float32)
    for b in range(B):
        row_ind, col_ind = _linear_sum_assignment(-score_np[b])
        for r, c in zip(row_ind, col_ind):
            if col_ind[col_ind[c]] == c:
                binary[b, r, c] = 1.0
    return binary


# ----------------------------------------------------------------------------
# Full post_process forward
# ----------------------------------------------------------------------------
def post_process(x, mask):
    B, L, _ = x.shape
    Lp = _round_up(L, _LANES)                 # lane-dense, (8,128)-aligned tile
    mask_f = mask.astype(jnp.float32)

    # 1) elementwise hot path on TPU (lane-dense flattened layout).
    score = _score(x, mask_f)

    # 2) Hungarian matching + mutual-pair filter on host.
    # TODO(synk): linear_sum_assignment is a sequential, data-dependent host
    # algorithm with no Pallas equivalent; it (plus this blocking device->host
    # copy) dominates end-to-end wall clock, not the TPU kernels.
    score_np = np.asarray(jax.device_get(score))
    binary_p = jnp.asarray(_hungarian_binary(score_np, Lp))

    # 3) mask + symmetrize + sequential conflict resolution on TPU.
    pad = Lp - L
    mask_p = jnp.pad(mask_f, ((0, 0), (0, pad), (0, pad)))
    out = _resolve(binary_p, mask_p, n_valid=L)
    return out[:, :L, :L]


# ----------------------------------------------------------------------------
# NumPy reference for the resolve stage (exact mirror of the torch loop)
# ----------------------------------------------------------------------------
def _resolve_reference(binary, mask):
    sec = (binary * mask).astype(np.float32)
    sec = sec + np.swapaxes(sec, 1, 2)
    B, L, _ = sec.shape
    for b in range(B):
        for i in range(L):
            if sec[b, i, :].sum() > 1:
                mi = int(np.argmax(sec[b, i, :]))
                sec[b, i, :] = 0.0
                sec[b, i, mi] = 1.0
            if sec[b, :, i].sum() > 1:
                mi = int(np.argmax(sec[b, :, i]))
                sec[b, :, i] = 0.0
                sec[b, mi, i] = 1.0
    return sec


if __name__ == "__main__":
    B, L = 2, 16
    key = jax.random.PRNGKey(0)
    kx, km = jax.random.split(key)
    x = jax.random.normal(kx, (B, L, L), dtype=jnp.float32) * 2.0
    m = (jax.random.uniform(km, (B, L, L)) > 0.3).astype(jnp.float32)
    mask = m * jnp.swapaxes(m, 1, 2)          # symmetric 0/1 constraint mask

    sec_struct = post_process(x, mask)
    jax.block_until_ready(sec_struct)
    assert sec_struct.shape == (B, L, L)

    # Verify the resolve stage against a NumPy reference (same binary/mask
    # inputs -> exact 0/1/2 float arithmetic, so results must match).
    Lp = _round_up(L, _LANES)
    score_np = np.asarray(jax.device_get(_score(x, mask.astype(jnp.float32))))
    binary_np = _hungarian_binary(score_np, Lp)[:, :L, :L]
    ref = _resolve_reference(binary_np, np.asarray(mask, dtype=np.float32))
    assert np.allclose(np.asarray(sec_struct), ref, atol=1e-5), \
        "resolve kernel does not match NumPy reference"

    print("KERNEL_OK")
</pallas_src>

<mosaic_0001>
module attributes {stable_mosaic.version = 11 : i64} {
  func.func @_score_kernel(%arg0: i32, %arg1: memref<8x128xf32, #tpu.memory_space<vmem>>, %arg2: memref<8x128xf32, #tpu.memory_space<vmem>>, %arg3: memref<8x128xf32, #tpu.memory_space<vmem>>) attributes {dimension_semantics = [#tpu.dimension_semantics<parallel>], iteration_bounds = array<i64: 1>, scalar_prefetch = 0 : i64, scratch_operands = 0 : i64, tpu.core_type = #tpu.core_type<tc>, window_params = [{transform_indices = @transform_0, window_bounds = array<i64: 8, 128>}, {transform_indices = @transform_1, window_bounds = array<i64: 8, 128>}, {transform_indices = @transform_2, window_bounds = array<i64: 8, 128>}]} {
    %c0 = arith.constant 0 : index
    %c0_0 = arith.constant 0 : index
    %0 = vector.load %arg1[%c0, %c0_0] : memref<8x128xf32, #tpu.memory_space<vmem>>, vector<8x128xf32>
    %1 = arith.negf %0 : vector<8x128xf32>
    %2 = math.exp %1 : vector<8x128xf32>
    %cst = arith.constant 1.000000e+00 : f32
    %3 = vector.broadcast %cst : f32 to vector<8x128xf32>
    %4 = arith.addf %3, %2 : vector<8x128xf32>
    %5 = arith.divf %3, %4 : vector<8x128xf32>
    %c0_1 = arith.constant 0 : index
    %c0_2 = arith.constant 0 : index
    %6 = vector.load %arg2[%c0_1, %c0_2] : memref<8x128xf32, #tpu.memory_space<vmem>>, vector<8x128xf32>
    %7 = arith.mulf %5, %6 : vector<8x128xf32>
    %cst_3 = arith.constant 5.000000e-01 : f32
    %8 = vector.broadcast %cst_3 : f32 to vector<8x128xf32>
    %9 = arith.cmpf ogt, %7, %8 : vector<8x128xf32>
    %cst_4 = arith.constant 0.000000e+00 : f32
    %10 = vector.broadcast %cst_4 : f32 to vector<8x128xf32>
    %11 = arith.select %9, %7, %10 : vector<8x128xi1>, vector<8x128xf32>
    %c0_5 = arith.constant 0 : index
    %c0_6 = arith.constant 0 : index
    %12 = vector.load %arg3[%c0_5, %c0_6] : memref<8x128xf32, #tpu.memory_space<vmem>>, vector<8x128xf32>
    tpu.vector_store %arg3[%c0_5, %c0_6], %11 {strides = array<i32>} : memref<8x128xf32, #tpu.memory_space<vmem>>, vector<8x128xf32>,
    return
  }
  func.func @transform_0(%arg0: i32) -> (i32, i32) {
    %c0_i32 = arith.constant 0 : i32
    %c0_i32_0 = arith.constant 0 : i32
    return %arg0, %c0_i32 : i32, i32
  }
  func.func @transform_1(%arg0: i32) -> (i32, i32) {
    %c0_i32 = arith.constant 0 : i32
    %c0_i32_0 = arith.constant 0 : i32
    return %arg0, %c0_i32 : i32, i32
  }
  func.func @transform_2(%arg0: i32) -> (i32, i32) {
    %c0_i32 = arith.constant 0 : i32
    %c0_i32_0 = arith.constant 0 : i32
    return %arg0, %c0_i32 : i32, i32
  }
}

</mosaic_0001>

<bundles_post_ra>
// kernel: _score.1
= control target key start
LH: loop header
LB: loop body
LE: loop exit
PB: predicated region body
PF: predicated region fallthrough
CT: control target
= control target key end

     0   :  { %s56_s0 = inlined_call_operand.vmem [shape: f32[8,128], index: 0, kind: input, shape index: {}]   ;;  %s57_s1 = inlined_call_operand.vmem [shape: f32[8,128], index: 1, kind: input, shape index: {}]   ;;  %s58_s2 = inlined_call_operand.vmem [shape: f32[8,128], index: 2, kind: output, shape index: {}]  }
   0x1   :  { %v11_v0 = vld [vmem:[%s56_s0] sm:$0xff] }
   0x2   :  { %v27_v1 = vmul.f32 -1.442695, %v11_v0  ;;  %v18_v4 = vld [vmem:[%s57_s1] sm:$0xff] }
   0x4   :  { %28 = vpow2.f32 %v27_v1 }
   0xe   :  { %v29_v2 = vpop.eup %28 }
   0xf   :  { %v15_v3 = vadd.f32 1.0, %v29_v2 }
  0x11   :  { %30 = vrcp.f32 %v15_v3 }
  0x1b   :  { %v31_v5 = vpop.eup %30 }
  0x1c   :  { %v19_v6 = vmul.f32 %v31_v5, %v18_v4 }
  0x1e   :  { %vm20_vm0 = vcmp.gt.f32.partialorder %v19_v6, 0.5 }
  0x1f   :  { %v21_v7 = vsel %vm20_vm0, %v19_v6, 0.0 }
  0x20   :  { %22 = vst [vmem:[%s58_s2] sm:$0xff] %v21_v7 }

</bundles_post_ra>
